<compile_context>
chip_gen: v7x
topology: tpu7x:2x2x1
jax: 0.10.0
libtpu: 0.0.40
codegen_flags: <defaults>
</compile_context>

<pallas_src>
import jax
import jax.numpy as jnp
from jax.experimental import pallas as pl
from jax.experimental.pallas import tpu as pltpu

IN_DIM = 60
OUT_DIM = 40
DEFAULT_TB = 8192  # rows per batch tile; ~6.6 MiB double-buffered VMEM


def _fused_linear_kernel(x_ref, w_ref, b_ref, o_ref):
    """One MXU dot per batch tile: o = x @ W_sum + b_sum (f32 accumulation)."""
    acc = jnp.dot(x_ref[...], w_ref[...], preferred_element_type=jnp.float32)
    o_ref[...] = (acc + b_ref[...]).astype(o_ref.dtype)


def fold_params(w1, w2, w3, b1, b2, b3):
    """Fold the three static linears into one (do this once, not per call)."""
    return w1 + w2 + w3, b1 + b2 + b3


def _pick_tile(batch, tb):
    """Largest-reasonable batch tile; >=2 grid steps for large B (v7x 2 TCs)."""
    if batch <= 8:
        return batch
    half = -(-batch // 2)              # ceil(B/2) -> at least 2 grid steps
    half = ((half + 7) // 8) * 8       # sublane-align
    return min(tb, half)


def mm_plus_mm(x, w_sum, b_sum, *, tb=DEFAULT_TB):
    """x: (B, IN_DIM); w_sum: (IN_DIM, OUT_DIM); b_sum: (1, OUT_DIM) -> (B, OUT_DIM)."""
    B = x.shape[0]
    TB = _pick_tile(B, tb)
    grid = (pl.cdiv(B, TB),)

    return pl.pallas_call(
        _fused_linear_kernel,
        out_shape=jax.ShapeDtypeStruct((B, OUT_DIM), jnp.float32),
        grid=grid,
        in_specs=[
            pl.BlockSpec((TB, IN_DIM), lambda i: (i, 0)),        # x tile
            pl.BlockSpec((IN_DIM, OUT_DIM), lambda i: (0, 0)),   # folded weights
            pl.BlockSpec((1, OUT_DIM), lambda i: (0, 0)),        # folded bias
        ],
        out_specs=pl.BlockSpec((TB, OUT_DIM), lambda i: (i, 0)),
        compiler_params=pltpu.CompilerParams(
            dimension_semantics=("parallel",),   # shard batch tiles across TCs
            vmem_limit_bytes=32 * 1024 * 1024,   # explicit headroom at big TB
        ),
        cost_estimate=pl.CostEstimate(
            flops=2 * B * IN_DIM * OUT_DIM,
            transcendentals=0,
            bytes_accessed=(B * IN_DIM * 4            # x
                            + IN_DIM * OUT_DIM * 4    # W_sum
                            + OUT_DIM * 4             # b_sum
                            + B * OUT_DIM * 4),       # output
        ),
    )(x, w_sum, b_sum)


def init_params(key):
    """Deterministic Linear-style init (uniform in +/- 1/sqrt(fan_in))."""
    ks = jax.random.split(key, 6)
    bound = 1.0 / jnp.sqrt(jnp.float32(IN_DIM))
    mk_w = lambda k: jax.random.uniform(
        k, (IN_DIM, OUT_DIM), jnp.float32, -bound, bound)
    mk_b = lambda k: jax.random.uniform(
        k, (1, OUT_DIM), jnp.float32, -bound, bound)
    w1, w2, w3 = mk_w(ks[0]), mk_w(ks[1]), mk_w(ks[2])
    b1, b2, b3 = mk_b(ks[3]), mk_b(ks[4]), mk_b(ks[5])
    return w1, w2, w3, b1, b2, b3


if __name__ == "__main__":
    key = jax.random.PRNGKey(0)
    k_x, k_p, k_x2, k_x3 = jax.random.split(key, 4)

    w1, w2, w3, b1, b2, b3 = init_params(k_p)
    w_sum, b_sum = fold_params(w1, w2, w3, b1, b2, b3)   # folded once

    def ref_fn(xx):
        return (xx @ w1 + b1) + (xx @ w2 + b2) + (xx @ w3 + b3)

    # Case 1: the module's own shape (batch=1, 60 features), single block.
    x = jax.random.normal(k_x, (1, IN_DIM), jnp.float32)
    out = jax.block_until_ready(mm_plus_mm(x, w_sum, b_sum))
    assert out.shape == (1, OUT_DIM)
    assert jnp.allclose(out, ref_fn(x), atol=1e-5, rtol=1e-5)

    # Case 2: modest batch with a forced small tile -> multi-step pipelined
    # grid with exact tiles (3 x 128 rows).
    x2 = jax.random.normal(k_x2, (384, IN_DIM), jnp.float32)
    out2 = jax.block_until_ready(mm_plus_mm(x2, w_sum, b_sum, tb=128))
    assert out2.shape == (384, OUT_DIM)
    assert jnp.allclose(out2, ref_fn(x2), atol=1e-5, rtol=1e-5)

    # Case 3: ragged last tile (300 rows, tiles of 128/128/44) to confirm the
    # partial final output block is masked correctly.
    x3 = jax.random.normal(k_x3, (300, IN_DIM), jnp.float32)
    out3 = jax.block_until_ready(mm_plus_mm(x3, w_sum, b_sum, tb=128))
    assert out3.shape == (300, OUT_DIM)
    assert jnp.allclose(out3, ref_fn(x3), atol=1e-5, rtol=1e-5)

    print("KERNEL_OK")
</pallas_src>

<mosaic_0001>
module attributes {stable_mosaic.version = 11 : i64} {
  func.func @_fused_linear_kernel(%arg0: i32, %arg1: memref<1x60xf32, #tpu.memory_space<vmem>>, %arg2: memref<60x40xf32, #tpu.memory_space<vmem>>, %arg3: memref<1x40xf32, #tpu.memory_space<vmem>>, %arg4: memref<1x40xf32, #tpu.memory_space<vmem>>) attributes {dimension_semantics = [#tpu.dimension_semantics<parallel>], iteration_bounds = array<i64: 1>, scalar_prefetch = 0 : i64, scratch_operands = 0 : i64, tpu.core_type = #tpu.core_type<tc>, window_params = [{transform_indices = @transform_0, window_bounds = array<i64: 1, 60>}, {pipeline_mode = #tpu.pipeline_mode<synchronous>, transform_indices = @transform_1, window_bounds = array<i64: 60, 40>}, {pipeline_mode = #tpu.pipeline_mode<synchronous>, transform_indices = @transform_2, window_bounds = array<i64: 1, 40>}, {transform_indices = @transform_3, window_bounds = array<i64: 1, 40>}]} {
    %c0 = arith.constant 0 : index
    %c0_0 = arith.constant 0 : index
    %0 = vector.load %arg1[%c0, %c0_0] : memref<1x60xf32, #tpu.memory_space<vmem>>, vector<1x60xf32>
    %c0_1 = arith.constant 0 : index
    %c0_2 = arith.constant 0 : index
    %1 = vector.load %arg2[%c0_1, %c0_2] : memref<60x40xf32, #tpu.memory_space<vmem>>, vector<60x40xf32>
    %cst = arith.constant dense<0.000000e+00> : vector<1x40xf32>
    %2 = tpu.matmul %0, %1, %cst {dimension_numbers = #tpu.dot_dimension_numbers<[1], [0], [0], [1], [0, 0, 1, 1], [], []>} : vector<1x60xf32>, vector<60x40xf32>, vector<1x40xf32> -> vector<1x40xf32>
    %c0_3 = arith.constant 0 : index
    %c0_4 = arith.constant 0 : index
    %3 = vector.load %arg3[%c0_3, %c0_4] : memref<1x40xf32, #tpu.memory_space<vmem>>, vector<1x40xf32>
    %4 = arith.addf %2, %3 : vector<1x40xf32>
    %c0_5 = arith.constant 0 : index
    %c0_6 = arith.constant 0 : index
    %5 = vector.load %arg4[%c0_5, %c0_6] : memref<1x40xf32, #tpu.memory_space<vmem>>, vector<1x40xf32>
    tpu.vector_store %arg4[%c0_5, %c0_6], %4 {strides = array<i32>} : memref<1x40xf32, #tpu.memory_space<vmem>>, vector<1x40xf32>,
    return
  }
  func.func @transform_0(%arg0: i32) -> (i32, i32) {
    %c0_i32 = arith.constant 0 : i32
    %c0_i32_0 = arith.constant 0 : i32
    return %arg0, %c0_i32 : i32, i32
  }
  func.func @transform_1(%arg0: i32) -> (i32, i32) {
    %c0_i32 = arith.constant 0 : i32
    %c0_i32_0 = arith.constant 0 : i32
    %c0_i32_1 = arith.constant 0 : i32
    return %c0_i32, %c0_i32_0 : i32, i32
  }
  func.func @transform_2(%arg0: i32) -> (i32, i32) {
    %c0_i32 = arith.constant 0 : i32
    %c0_i32_0 = arith.constant 0 : i32
    %c0_i32_1 = arith.constant 0 : i32
    return %c0_i32, %c0_i32_0 : i32, i32
  }
  func.func @transform_3(%arg0: i32) -> (i32, i32) {
    %c0_i32 = arith.constant 0 : i32
    %c0_i32_0 = arith.constant 0 : i32
    return %arg0, %c0_i32 : i32, i32
  }
}

</mosaic_0001>

<bundles_post_ra>
// kernel: tpu_custom_call.1
= control target key start
LH: loop header
LB: loop body
LE: loop exit
PB: predicated region body
PF: predicated region fallthrough
CT: control target
= control target key end

     0   :  { %v191_v3 = vmov 0.0|0.0   ;;  %vm192_vm0 = vmmov 0   ;;  %v193_v6 = vmov 0.0   ;;  %s258_s0 = inlined_call_operand.vmem [shape: f32[1,60], index: 0, kind: input, shape index: {}]   ;;  %s259_s1 = inlined_call_operand.vmem [shape: f32[60,40], index: 1, kind: input, shape index: {}]   ;;  %s260_s2 = inlined_call_operand.vmem [shape: f32[1,40], index: 2, kind: input, shape index: {}]   ;;  %s261_s3 = inlined_call_operand.hbm [shape: f32[1,40], index: 3, kind: output, shape index: {}]  }
   0x1   :  { %v16_v0 = vld [vmem:[%s259_s1] sm:$0xff]  ;;  %v17_v1 = vld [vmem:[%s259_s1 + $0x8] sm:$0xff]  ;;  %v18_v2 = vld [vmem:[%s259_s1 + $0x10] sm:$0xff]  ;;  %149 = vmatprep.subr.bf16.mxu0 %v191_v3  ;;  %146 = vmatprep.mubr.msk.f32.mxu0 %vm192_vm0, %v193_v6 }
   0x2   :  { %v150_v4 = vpack.c.bf16 %v17_v1, %v16_v0  ;;  %v19_v5 = vld [vmem:[%s259_s1 + $0x18] sm:$0xff] }
   0x3   :  { %v153_v7 = vpack.c.bf16 %v19_v5, %v18_v2 }
   0x4   :  { %151 = vmatpush3.bf16.msra.mxu0 %v150_v4 }
   0x5   :  { %8 = vsyncpa [#allocation3], 0  ;;  %152 = vmatprep.subr.bf16.mxu0 %v191_v3  ;;  %v20_v8 = vld [vmem:[%s259_s1 + $0x20] sm:$0xff]  ;;  %v21_v9 = vld [vmem:[%s259_s1 + $0x28] sm:$0xff]  ;;  %vm29_vm1 = vcmask 1043456   ;;  %vm194_vm2 = vmmov 1  }
   0x6   :  { %v156_v10 = vpack.c.bf16 %v21_v9, %v20_v8  ;;  %v22_v11 = vld [vmem:[%s259_s1 + $0x30] sm:$0xff]  ;;  %v23_v12 = vld [vmem:[%s259_s1 + $0x38] sm:$0xf]  ;;  %vm160_vm3 = vmpackc.low %vm29_vm1, %vm194_vm2  ;;  %vm25_vm4 = vcmask 490496   ;;  %s195_s5 = smov [#allocation2]   ;;  %vm103_vm5 = vcmask 319488  }
   0x7   :  { %v159_v13 = vpack.c.bf16 %v23_v12, %v22_v11  ;;  %v15_v14 = vld [vmem:[%s258_s0] sm:$0x1]  ;;  %s111_s6 = sshll.u32 %s195_s5, 4  ;;  %s112_s6 = int_to_ptr.vmem [resolvable:$true] %s111_s6 }
   0x8   :  { %154 = vmatpush3.bf16.msra.mxu0 %v153_v7  ;;  %v24_v15 = vld [vmem:[%s260_s2] sm:$0x1]  ;;  %s167_s1 = scalar_lea.vmem %s112_s6, 16  ;;  %s171_s7 = scalar_lea.vmem %s112_s6, 32 }
   0x9   :  { %155 = vmatprep.subr.bf16.mxu0 %v191_v3  ;;  %p168_p0 = scmp.ne.s32.totalorder %s112_s6, %s167_s1  ;;  %p172_p1 = scmp.lt.s32.totalorder %s112_s6, %s112_s6 }
   0xa   :  { %p173_p2 = scmp.lt.s32.totalorder %s171_s7, %s167_s1 }
   0xc   :  { %157 = vmatpush3.bf16.msra.mxu0 %v156_v10  ;;  %p174_p3 = por %p173_p2, %p172_p1 }
   0xd   :  { %158 = vmatprep.subr.bf16.mxu0 %v191_v3 }
   0xe   :  { %p175_p4 = pnand %p174_p3, %p168_p0 }
  0x10   :  { %161 = vmatpush3.bf16.msk.msra.mxu0 %vm160_vm3, %v159_v13 }
  0x13   :  { %147 = vmatmul.mubr.msk.f32.vlgmr.msra.gmra.mrb[0].mxu0 %vm25_vm4, %v15_v14 }
  0xe6   :  { %v99_v16 = vpop.f32.mrb[0].mxu0 }
  0xe7   :  { %v100_v17 = vadd.f32 %v99_v16, %v24_v15  ;;  %v148_v18 = vpop.f32.mrb[1].mxu0 }
  0xe9   :  { %104 = vst.msk [vmem:[#allocation2] sm:$0x1] %vm103_vm5, %v100_v17 }
  0xea   :  { %178 = shalt.err (!%p175_p4)
}
  0xeb   :  { %s179_s2 = scalar_lea.hbm %s261_s3, 16 }
  0xec   :  { %p180_p5 = scmp.ne.s32.totalorder %s261_s3, %s179_s2  ;;  %p183_p6 = scmp.lt.u32.totalorder %s179_s2, %s261_s3 }
  0xee   :  { %p185_p7 = pnand %p183_p6, %p180_p5 }
  0xf0   :  { %188 = shalt.err (!%p185_p7)
}
  0xf1   :  { %114 = dma.vmem_to_hbm [thread:$0]  %s112_s6, 16, %s261_s3, [#allocation3]  }
  0xf2   :  { %189 = dma.done.wait [#allocation3], 16  }
  0xf3   :  { %190 = vsyncadd [#allocation3], 4294967280 }
  0xf4   :  { %118 = vsyncpa [#allocation3], 1 }

</bundles_post_ra>
